<compile_context>
chip_gen: v7x
topology: tpu7x:2x2x1
jax: 0.10.0
libtpu: 0.0.40
codegen_flags: <defaults>
</compile_context>

<pallas_src>
import functools

import jax
import jax.numpy as jnp
from jax.experimental import pallas as pl
from jax.experimental.pallas import tpu as pltpu


def _contrastive_kernel(o1_ref, o2_ref, label_ref, out_ref, *,
                        margin, batch, block_rows):
    pid = pl.program_id(0)
    last = pl.num_programs(0) - 1

    @pl.when(pid == 0)
    def _():
        out_ref[0] = jnp.float32(0.0)

    eps = jnp.float32(1e-6)
    o1 = o1_ref[...].astype(jnp.float32)        # (TB, D)
    o2 = o2_ref[...].astype(jnp.float32)        # (TB, D)
    label = label_ref[...].astype(jnp.float32)  # (TB, 1)

    diff = o1 - o2 + eps                                    # F.pairwise_distance adds eps
    d2_sum = jnp.sum(diff * diff, axis=-1, keepdims=True)   # (TB, 1) squared distance
    d = jnp.sqrt(d2_sum)                                    # needed only for the hinge
    hinge = jnp.maximum(jnp.float32(margin) - d, 0.0)
    per_row = (1.0 - label) * d2_sum + label * (hinge * hinge)  # (TB, 1)

    # Mask rows that fall past the true batch (partially filled last tile).
    row = jax.lax.broadcasted_iota(jnp.int32, per_row.shape, 0)
    global_row = pid * block_rows + row
    per_row = jnp.where(global_row < batch, per_row, 0.0)

    out_ref[0] += jnp.sum(per_row)

    @pl.when(pid == last)
    def _():
        out_ref[0] = out_ref[0] / jnp.float32(batch)


def contrastive_loss(output1, output2, label, margin=2.0, block_rows=None):
    B, D = output1.shape
    assert output2.shape == (B, D)
    label2d = label.reshape(B, 1)

    if block_rows is None:
        # Size tiles so 2 inputs x 2 pipeline buffers stay well inside the
        # scoped-VMEM limit on every TPU generation (v7x has 64 MiB physical).
        itemsize = max(output1.dtype.itemsize, output2.dtype.itemsize)
        budget = 12 * 1024 * 1024                   # bytes for double-buffered inputs
        rows = budget // (4 * D * itemsize)
        block_rows = max(8, min(1024, int(rows)))
    if block_rows >= B:
        block_rows = B                              # full-batch block is always legal
    else:
        block_rows = max(8, (block_rows // 8) * 8)  # keep sublane alignment
    num_tiles = pl.cdiv(B, block_rows)

    itemsize1 = output1.dtype.itemsize
    itemsize2 = output2.dtype.itemsize
    cost = pl.CostEstimate(
        flops=4 * B * D + 8 * B,
        transcendentals=B,
        bytes_accessed=B * D * (itemsize1 + itemsize2)
        + B * label2d.dtype.itemsize + 4,
    )

    out = pl.pallas_call(
        functools.partial(_contrastive_kernel, margin=float(margin),
                          batch=B, block_rows=block_rows),
        out_shape=jax.ShapeDtypeStruct((1,), jnp.float32),
        grid=(num_tiles,),
        in_specs=[
            pl.BlockSpec((block_rows, D), lambda i: (i, 0)),
            pl.BlockSpec((block_rows, D), lambda i: (i, 0)),
            pl.BlockSpec((block_rows, 1), lambda i: (i, 0)),
        ],
        out_specs=pl.BlockSpec(memory_space=pltpu.MemorySpace.SMEM),
        compiler_params=pltpu.CompilerParams(
            dimension_semantics=("arbitrary",),      # carried scalar accumulator
            vmem_limit_bytes=32 * 1024 * 1024,
        ),
        cost_estimate=cost,
    )(output1, output2, label2d)
    return out[0]


def _reference(output1, output2, label, margin=2.0):
    # Pure-JAX reference mirroring the PyTorch module.
    eps = 1e-6
    d = jnp.sqrt(jnp.sum((output1 - output2 + eps) ** 2, axis=-1))
    hinge = jnp.maximum(margin - d, 0.0)
    return jnp.mean((1.0 - label) * d ** 2 + label * hinge ** 2)


if __name__ == "__main__":
    key = jax.random.PRNGKey(0)
    k1, k2, k3 = jax.random.split(key, 3)

    B, D = 20, 32  # small siamese embedding batch (B deliberately not a multiple of 8)
    output1 = jax.random.normal(k1, (B, D), dtype=jnp.float32)
    output2 = jax.random.normal(k2, (B, D), dtype=jnp.float32)
    label = jax.random.bernoulli(k3, 0.5, (B,)).astype(jnp.float32)

    # block_rows=8 forces a multi-tile grid with a partially filled last tile,
    # exercising the pipelined + masked-mean path even at this small size.
    loss = contrastive_loss(output1, output2, label, margin=2.0, block_rows=8)
    jax.block_until_ready(loss)

    ref = _reference(output1, output2, label, margin=2.0)
    assert jnp.allclose(loss, ref, rtol=1e-5, atol=1e-5), (loss, ref)

    print("KERNEL_OK")
</pallas_src>

<mosaic_0001>
module attributes {stable_mosaic.version = 11 : i64} {
  func.func @_contrastive_kernel(%arg0: i32, %arg1: memref<8x32xf32, #tpu.memory_space<vmem>>, %arg2: memref<8x32xf32, #tpu.memory_space<vmem>>, %arg3: memref<8x1xf32, #tpu.memory_space<vmem>>, %arg4: memref<1xf32, #tpu.memory_space<smem>>) attributes {dimension_semantics = [#tpu.dimension_semantics<arbitrary>], iteration_bounds = array<i64: 3>, scalar_prefetch = 0 : i64, scratch_operands = 0 : i64, tpu.core_type = #tpu.core_type<tc>, window_params = [{transform_indices = @transform_0, window_bounds = array<i64: 8, 32>}, {transform_indices = @transform_1, window_bounds = array<i64: 8, 32>}, {transform_indices = @transform_2, window_bounds = array<i64: 8, 1>}, {transform_indices = @transform_3, window_bounds = array<i64: 1>}]} {
    %c0_i32 = arith.constant 0 : i32
    %0 = arith.cmpi eq, %arg0, %c0_i32 : i32
    %1 = arith.extui %0 : i1 to i32
    %c0_i32_0 = arith.constant 0 : i32
    %2 = arith.cmpi ne, %1, %c0_i32_0 : i32
    scf.if %2 {
      %cst_15 = arith.constant 0.000000e+00 : f32
      %c0_16 = arith.constant 0 : index
      %41 = memref.load %arg4[%c0_16] : memref<1xf32, #tpu.memory_space<smem>>
      memref.store %cst_15, %arg4[%c0_16] : memref<1xf32, #tpu.memory_space<smem>>
    } else {
    }
    %c0 = arith.constant 0 : index
    %c0_1 = arith.constant 0 : index
    %3 = vector.load %arg1[%c0, %c0_1] : memref<8x32xf32, #tpu.memory_space<vmem>>, vector<8x32xf32>
    %c0_2 = arith.constant 0 : index
    %c0_3 = arith.constant 0 : index
    %4 = vector.load %arg2[%c0_2, %c0_3] : memref<8x32xf32, #tpu.memory_space<vmem>>, vector<8x32xf32>
    %c0_4 = arith.constant 0 : index
    %c0_5 = arith.constant 0 : index
    %5 = vector.load %arg3[%c0_4, %c0_5] : memref<8x1xf32, #tpu.memory_space<vmem>>, vector<8x1xf32>
    %6 = arith.subf %3, %4 : vector<8x32xf32>
    %cst = arith.constant 9.99999997E-7 : f32
    %7 = vector.broadcast %cst : f32 to vector<8x32xf32>
    %8 = arith.addf %6, %7 : vector<8x32xf32>
    %9 = arith.mulf %8, %8 : vector<8x32xf32>
    %cst_6 = arith.constant dense<0.000000e+00> : vector<8xf32>
    %10 = vector.multi_reduction <add>, %9, %cst_6 [1] : vector<8x32xf32> to vector<8xf32>
    %11 = vector.shape_cast %10 : vector<8xf32> to vector<8x1xf32>
    %12 = math.sqrt %11 : vector<8x1xf32>
    %cst_7 = arith.constant 2.000000e+00 : f32
    %13 = vector.broadcast %cst_7 : f32 to vector<8x1xf32>
    %14 = arith.subf %13, %12 : vector<8x1xf32>
    %cst_8 = arith.constant 0.000000e+00 : f32
    %15 = vector.broadcast %cst_8 : f32 to vector<8x1xf32>
    %16 = arith.maximumf %14, %15 : vector<8x1xf32>
    %cst_9 = arith.constant 1.000000e+00 : f32
    %17 = vector.broadcast %cst_9 : f32 to vector<8x1xf32>
    %18 = arith.subf %17, %5 : vector<8x1xf32>
    %19 = arith.mulf %18, %11 : vector<8x1xf32>
    %20 = arith.mulf %16, %16 : vector<8x1xf32>
    %21 = arith.mulf %5, %20 : vector<8x1xf32>
    %22 = arith.addf %19, %21 : vector<8x1xf32>
    %23 = tpu.iota {dimensions = array<i32: 0>} : vector<8x1xi32>
    %c8_i32 = arith.constant 8 : i32
    %24 = arith.muli %arg0, %c8_i32 : i32
    %25 = vector.broadcast %24 : i32 to vector<8x1xi32>
    %26 = arith.addi %25, %23 : vector<8x1xi32>
    %c20_i32 = arith.constant 20 : i32
    %27 = vector.broadcast %c20_i32 : i32 to vector<8x1xi32>
    %28 = arith.cmpi slt, %26, %27 : vector<8x1xi32>
    %cst_10 = arith.constant 0.000000e+00 : f32
    %29 = vector.broadcast %cst_10 : f32 to vector<8x1xf32>
    %30 = arith.select %28, %22, %29 : vector<8x1xi1>, vector<8x1xf32>
    %c0_11 = arith.constant 0 : index
    %31 = memref.load %arg4[%c0_11] : memref<1xf32, #tpu.memory_space<smem>>
    %32 = vector.shape_cast %30 : vector<8x1xf32> to vector<1x8x1xf32>
    %cst_12 = arith.constant dense<0.000000e+00> : vector<1xf32>
    %33 = vector.multi_reduction <add>, %32, %cst_12 [1, 2] : vector<1x8x1xf32> to vector<1xf32>
    %34 = vector.shape_cast %33 : vector<1xf32> to vector<1x1x1xf32>
    %35 = vector.extract %34[0, 0, 0] : f32 from vector<1x1x1xf32>
    %36 = arith.addf %31, %35 : f32
    %c0_13 = arith.constant 0 : index
    %37 = memref.load %arg4[%c0_13] : memref<1xf32, #tpu.memory_space<smem>>
    memref.store %36, %arg4[%c0_13] : memref<1xf32, #tpu.memory_space<smem>>
    %c2_i32 = arith.constant 2 : i32
    %38 = arith.cmpi eq, %arg0, %c2_i32 : i32
    %39 = arith.extui %38 : i1 to i32
    %c0_i32_14 = arith.constant 0 : i32
    %40 = arith.cmpi ne, %39, %c0_i32_14 : i32
    scf.if %40 {
      %c0_15 = arith.constant 0 : index
      %41 = memref.load %arg4[%c0_15] : memref<1xf32, #tpu.memory_space<smem>>
      %cst_16 = arith.constant 2.000000e+01 : f32
      %42 = arith.divf %41, %cst_16 : f32
      %c0_17 = arith.constant 0 : index
      %43 = memref.load %arg4[%c0_17] : memref<1xf32, #tpu.memory_space<smem>>
      memref.store %42, %arg4[%c0_17] : memref<1xf32, #tpu.memory_space<smem>>
    } else {
    }
    return
  }
  func.func @transform_0(%arg0: i32) -> (i32, i32) {
    %c0_i32 = arith.constant 0 : i32
    %c0_i32_0 = arith.constant 0 : i32
    return %arg0, %c0_i32 : i32, i32
  }
  func.func @transform_1(%arg0: i32) -> (i32, i32) {
    %c0_i32 = arith.constant 0 : i32
    %c0_i32_0 = arith.constant 0 : i32
    return %arg0, %c0_i32 : i32, i32
  }
  func.func @transform_2(%arg0: i32) -> (i32, i32) {
    %c0_i32 = arith.constant 0 : i32
    %c0_i32_0 = arith.constant 0 : i32
    return %arg0, %c0_i32 : i32, i32
  }
  func.func @transform_3(%arg0: i32) -> i32 {
    %c0_i32 = arith.constant 0 : i32
    %c0_i32_0 = arith.constant 0 : i32
    return %c0_i32 : i32
  }
}

</mosaic_0001>

<bundles_post_ra>
// kernel: tpu_custom_call.1
= control target key start
LH: loop header
LB: loop body
LE: loop exit
PB: predicated region body
PF: predicated region fallthrough
CT: control target
= control target key end

     0   :  { %8 = vsyncpa [#allocation3], 0  ;;  %s665_s0 = inlined_call_operand.vmem [shape: f32[20,32], index: 0, kind: input, shape index: {}]   ;;  %s666_s1 = inlined_call_operand.hbm [shape: f32[20,32], index: 1, kind: input, shape index: {}]   ;;  %s667_s2 = inlined_call_operand.vmem [shape: f32[20,1], index: 2, kind: input, shape index: {}]   ;;  %s668_s3 = inlined_call_operand.hbm [shape: f32[1], index: 3, kind: output, shape index: {}]  }
   0x1   :  { %10 = vsyncpa [#allocation3 + $0x1], 0 }
   0x2   :  { %11 = vsyncpa [#allocation4], 0  ;;  %s527_s12 = smov 0   ;;  %s529_s13 = smov 0  }
   0x3   :  { %s531_s14 = smov 0   ;;  %s533_s15 = smov 0  }
   0x4 LB: > { %s546_s16 = sadd.s32 4294967295, %s502_s15   ;;  %s549_s17 = sadd.s32 1, %s502_s15   ;;  %s502_s15 = sphi %s533_s15, %s678_s15   ;;  %s498_s14 = sphi %s531_s14, %s677_s14   ;;  %s494_s13 = sphi %s529_s13, %s676_s13   ;;  %s490_s12 = sphi %s527_s12, %s675_s12  }
   0x5   : > { %s47_s18 = ssub.s32 %s502_s15, %s549_s17  ;;  %s50_s19 = sadd.s32 1, %s498_s14 }
   0x6   : > { %p48_p0 = scmp.eq.s32.totalorder %s47_s18, 0  ;;  %p57_p1 = scmp.ne.s32.totalorder %s498_s14, %s494_s13 }
   0x7   : > { %p58_p2 = scmp.eq.s32.totalorder %s502_s15, 0  ;;  %p63_p3 = scmp.ne.s32.totalorder %s494_s13, %s490_s12 }
   0x8   : > { %s559_s20 = scalar_select %p48_p0, %s498_s14, %s50_s19  }
   0x9   : > { %p59_p4 = por %p58_p2, %p57_p1  ;;  %p669_p5 = scmp.eq.s32.totalorder %s546_s16, 0 }
   0xa   : > { %p381_p6 = scmp.lt.s32.totalorder %s502_s15, 3  ;;  %s141_s22 = sand.u32 1, %s498_s14  }
   0xb   : > { %p565_p7 = por %p669_p5, %p63_p3  ;;  %s352_s23 = sshll.u32 %s141_s22, 3 }
   0xc   : > { %s353_s24 = sshll.u32 %s502_s15, 7  ;;  %s145_s28 = scalar_lea.vmem [#allocation2], %s352_s23 }
   0xd   : > { %s574_s27 = scalar_lea.hbm %s666_s1, %s353_s24  ;;  %s152_s29 = sshll.u32 %s145_s28, 4  ;;  %s576_s29 = int_to_ptr.vmem [resolvable:$true] %s152_s29 }
   0xe   : > { %p578_p8 = pnand %p381_p6, %p59_p4  ;;  %s142_s4 = scalar_lea.sflag [#allocation3], %s141_s22 }
   0xf   : > { %s422_s5 = scalar_lea.hbm %s574_s27, 128  ;;  %s427_s8 = scalar_lea.hbm %s666_s1, 384 }
  0x10   : > { %p423_p11 = scmp.ne.s32.totalorder %s574_s27, %s422_s5  ;;  %p424_p12 = pneg %p578_p8 }
  0x11   : > { %p428_p1 = scmp.lt.u32.totalorder %s574_s27, %s666_s1  ;;  %p429_p2 = scmp.lt.u32.totalorder %s427_s8, %s422_s5 }
  0x12   : > { %p425_p13 = pnand %p424_p12, %p423_p11  ;;  %p431_p4 = scmp.lt.u32.totalorder %s422_s5, %s574_s27 }
  0x13   : > { %p430_p3 = por %p429_p2, %p428_p1 }
  0x14   : > { %p426_p0 = pneg %p425_p13 }
  0x15   : > { %p432_p6 = por %p431_p4, %p430_p3 }
  0x17   : > { %p433_p5 = pnand %p432_p6, %p426_p0 }
  0x19   : > { %436 = shalt.err (!%p433_p5)
}
  0x1a   : > { %s437_s11 = scalar_lea.vmem %s576_s29, 128  ;;  %s504_s12 = smov [#allocation2]  }
  0x1b   : > { %p438_p11 = scmp.ne.s32.totalorder %s576_s29, %s437_s11  ;;  %s442_s18 = sshll.u32 %s504_s12, 4  ;;  %s443_s18 = int_to_ptr.vmem [resolvable:$false] %s442_s18 }
  0x1c   : > { %s444_s19 = scalar_lea.vmem %s443_s18, 256  ;;  %p445_p10 = scmp.lt.s32.totalorder %s576_s29, %s443_s18 }
  0x1d   : > { %p440_p13 = pnand %p438_p11, %p424_p12  ;;  %p446_p1 = scmp.lt.s32.totalorder %s444_s19, %s437_s11 }
  0x1f   : > { %p441_p9 = pneg %p440_p13  ;;  %p447_p2 = por %p446_p1, %p445_p10 }
  0x21   : > { %p448_p3 = pnand %p447_p2, %p441_p9 }
  0x23   : > { %451 = shalt.err (!%p448_p3)
}
  0x24   : > { %380 = dma.hbm_to_vmem [thread:$0]  (!%p578_p8), %s574_s27, 128, %s576_s29, %s142_s4  }
  0x25   : > { %p672_p5 = scmp.lt.s32.totalorder %s502_s15, 4  ;;  %p673_p0 = scmp.ge.s32.totalorder %s502_s15, 1 }
  0x27   : > { %p165_p12 = pnand %p673_p0, %p672_p5 }
  0x28   : > { %s170_s22 = sand.u32 (!%p165_p12), 1, %s494_s13  }
  0x29   : > { %168 = sbr.rel (%p165_p12) target bundleno = 447 (0x1bf), region = 32  ;;  %s355_s23 = sshll.u32 (!%p165_p12), %s170_s22, 3 }
  0x2a   : > { %s171_s24 = scalar_lea.sflag (!%p165_p12), [#allocation3], %s170_s22  ;;  %s174_s25 = scalar_lea.vmem (!%p165_p12), [#allocation2], %s355_s23 }
  0x30   : > { %481 = dma.done.wait (%p565_p7), %s171_s24, 128  }
  0x31   : > { %483 = vsyncadd (%p565_p7), %s171_s24, 4294967168  ;;  %p200_p9 = scmp.lt.s32.totalorder %s546_s16, 2  ;;  %v215_v1 = vld [vmem:[%s174_s25] sm:$0xff]  ;;  %vm220_vm0 = vcmask 261120   ;;  %v238_v8 = vlaneseq  ;;  %s359_s5 = sshll.u32 %s546_s16, 3  ;;  %vm246_vm4 = vcmask 7168  }
  0x32   : > { %v241_v16 = vstv %s359_s5  ;;  %s505_s6 = smov 0.0   ;;  %p674_p7 = scmp.eq.s32.totalorder %s546_s16, 0 }
  0x33   : > { %s201_s26 = scalar_select %p200_p9, %s546_s16, 2  ;;  %v239_v14 = vshrl.u32 %v238_v8, 7 }
  0x34   : > { %370 = sst [smem:[#allocation5]] (%p674_p7), %s505_s6  ;;  %p383_p8 = scmp.eq.s32.totalorder %s546_s16, 2 }
  0x35   : > { %s356_s27 = sshll.u32 %s201_s26, 3  ;;  %v242_v19 = vadd.s32 %v241_v16, %v239_v14  ;;  %s245_s7 = sld [smem:[#allocation5]] }
  0x36   : > { %s203_s29 = scalar_lea.vmem %s665_s0, %s356_s27  ;;  %s207_s4 = scalar_lea.vmem %s667_s2, %s356_s27 }
  0x37   : > { %v214_v0 = vld [vmem:[%s203_s29] sm:$0xff]  ;;  %vm243_vm3 = vcmp.lt.s32.totalorder %v242_v19, 20  ;;  %s452_s18 = scalar_lea.hbm %s668_s3, 16 }
  0x38   : > { %v217_v2 = vsub.f32 %v214_v0, %v215_v1  ;;  %v216_v12 = vld [vmem:[%s207_s4] sm:$0xff]  ;;  %p453_p10 = scmp.ne.s32.totalorder %s668_s3, %s452_s18  ;;  %p458_p11 = scmp.lt.u32.totalorder %s452_s18, %s668_s3 }
  0x39   : > { %v233_v18 = vsub.f32 1.0, %v216_v12 }
  0x3a   : > { %v218_v3 = vadd.f32 1e-06, %v217_v2  ;;  %p454_p4 = pnand %p453_p10, %p383_p8 }
  0x3c   : > { %v219_v4 = vmul.f32 %v218_v3, %v218_v3  ;;  %p455_p6 = pneg %p454_p4 }
  0x3e   : > { %v221_v5 = vsel %vm220_vm0, %v219_v4, 0.0  ;;  %p460_p13 = pnand %p458_p11, %p455_p6 }
  0x3f   : > { %222 = vadd.xlane.f32.xlu0 %v221_v5 }
  0xcc   : > { %v223_v6 = vpop.xlane.xlu0 %222 }
  0xcd   : > { %420 = vrsqrt.f32 %v223_v6  ;;  %vm226_vm1 = vcmp.eq.f32.partialorder %v223_v6, inf  ;;  %v229_v10 = vand.u32 2147483648, %v223_v6  ;;  %vm228_vm2 = vcmp.eq.f32.partialorder %v223_v6, 0.0 }
  0xce   : > { %v234_v21 = vmul.f32 %v233_v18, %v223_v6 }
  0xd7   : > { %v421_v7 = vpop.eup %420 }
  0xd8   : > { %v225_v9 = vmul.f32 %v421_v7, %v223_v6 }
  0xda   : > { %v227_v11 = vsel %vm226_vm1, %v223_v6, %v225_v9 }
  0xdb   : > { %v230_v13 = vsel %vm228_vm2, %v229_v10, %v227_v11 }
  0xdc   : > { %v231_v15 = vsub.f32 2.0, %v230_v13 }
  0xde   : > { %v232_v17 = vmax.f32 %v231_v15, 0.0 }
  0xe0   : > { %v235_v20 = vmul.f32 %v232_v17, %v232_v17 }
  0xe2   : > { %v236_v22 = vmul.f32 %v235_v20, %v216_v12 }
  0xe4   : > { %v237_v23 = vadd.f32 %v236_v22, %v234_v21 }
  0xe6   : > { %v244_v24 = vsel %vm243_vm3, %v237_v23, 0.0 }
  0xe7   : > { %v247_v25 = vsel %vm246_vm4, %v244_v24, 0.0 }
  0xe8   : > { %248 = vadd.xlane.f32.xlu0 %v247_v25 }
 0x175   : > { %v249_v26 = vpop.xlane.xlu0 %248 }
 0x176   : > { %v250_v27 = vrot.slane %v249_v26, 4 }
 0x178   : > { %v251_v28 = vadd.f32 %v250_v27, %v249_v26 }
 0x17a   : > { %v252_v29 = vrot.slane %v251_v28, 2 }
 0x17c   : > { %v253_v30 = vadd.f32 %v252_v29, %v251_v28 }
 0x17e   : > { %v254_v31 = vrot.slane %v253_v30, 1 }
 0x180   : > { %v255_v32 = vadd.f32 %v254_v31, %v253_v30 }
 0x182   : > { %365 = vpush %v255_v32 }
 0x1b3   : > { %s366_s8 = spop %365 }
 0x1b4   : > { %s257_s9 = sadd.f32 %s366_s8, %s245_s7 }
 0x1b6   : > { %259 = sst [smem:[#allocation5]] %s257_s9  ;;  %s267_s10 = smul.f32 0.05, %s257_s9 }
 0x1b8   : > { %372 = sst [smem:[#allocation5]] (%p383_p8), %s267_s10 }
 0x1b9   : > { %463 = shalt.err (!%p460_p13)
}
 0x1ba   : > { %s506_s25 = smov [#allocation5]  }
 0x1bb   : > { %374 = dma.smem_to_hbm (%p383_p8), %s506_s25, 16, %s668_s3, [#allocation4]  }
 0x1bc   : > { %485 = dma.done.wait (%p383_p8), [#allocation4], 16  }
 0x1bd   : > { %487 = vsyncadd (%p383_p8), [#allocation4], 4294967280 }
 0x1be   : > { %282 = sfence }
 0x1bf PF: > { %p14_p1 = scmp.ge.s32.totalorder %s549_s17, 5   ;;  %s675_s12 = smov %s494_s13 }
 0x1c0   : > { %s676_s13 = smov %s498_s14  ;;  %s677_s14 = smov %s559_s20 }
 0x1c1   : > { %s678_s15 = smov %s549_s17  ;;  %16 = sbr.rel (!%p14_p1) target bundleno = 4 (0x4), region = 85 }
 0x1c8   :  { %288 = vsyncpa [#allocation3], 1 }
 0x1c9   :  { %290 = vsyncpa [#allocation3 + $0x1], 1 }
 0x1ca   :  { %291 = vsyncpa [#allocation4], 1 }
 0x1cb   :  { %293 = vsyncpa [#allocation4 + $0x1], 1 }

</bundles_post_ra>
